<compile_context>
chip_gen: v7x
topology: tpu7x:2x2x1
jax: 0.10.0
libtpu: 0.0.40
codegen_flags: <defaults>
</compile_context>

<pallas_src>
import jax
import jax.numpy as jnp
from jax.experimental import pallas as pl
from jax.experimental.pallas import tpu as pltpu


# ----------------------------------------------------------------------------
# Forward: identity pass-through (zero-copy, zero HBM traffic).
# ----------------------------------------------------------------------------
def total_loss_fn_forward(gamma, alpha, grad_Loss_val_alpha, grad_Loss_val_weight,
                          mid, grad_alpha_gamma, beta):
    """Forward of TotalLossFn: returns `alpha` unchanged (no kernel needed)."""
    del gamma, grad_Loss_val_alpha, grad_Loss_val_weight, mid, grad_alpha_gamma, beta
    return alpha


# ----------------------------------------------------------------------------
# Fused Pallas backward kernel.
# ----------------------------------------------------------------------------
def _sublane_multiple(dtype) -> int:
    """Minimum second-to-last tile dim for this dtype (sub-32-bit dtypes pack
    along sublanes): 8 for 32-bit, 16 for bf16/f16, 32 for int8/fp8."""
    bits = jnp.dtype(dtype).itemsize * 8
    return max(8, 256 // max(bits, 1))


def _backward_kernel(gamma_ref, gla_ref, mid_ref, gag_ref, beta_ref,
                     g_gamma_ref, g_alpha_ref):
    """Single-VMEM-pass fused backward of total_loss_fn."""
    gamma = gamma_ref[...]
    grad_alpha = (gla_ref[...] - 10.0 * mid_ref[...]
                  + beta_ref[...] + 10.0 / (gamma * gamma))
    g_alpha_ref[...] = grad_alpha.astype(g_alpha_ref.dtype)
    g_gamma_ref[...] = (grad_alpha * gag_ref[...]).astype(g_gamma_ref.dtype)


def total_loss_fn_backward(gamma, grad_Loss_val_alpha, mid, grad_alpha_gamma, beta):
    """Fused grad computation: returns (grad_gamma, grad_alpha)."""
    shape = gamma.shape
    dtype = gamma.dtype
    itemsize = jnp.dtype(dtype).itemsize

    # Canonical 2D view (metadata-only reshape of contiguous arrays).
    if len(shape) == 0:
        rows, cols = 1, 1
    elif len(shape) == 1:
        rows, cols = 1, shape[0]
    else:
        cols = shape[-1]
        rows = gamma.size // cols

    sub = _sublane_multiple(dtype)

    # Tile rows only when it is free of padding/masking: cols lane-aligned and
    # rows a multiple of the packed sublane tile.  Otherwise one full block.
    block_rows = rows
    if cols % 128 == 0 and rows % sub == 0 and rows > sub:
        # 5 inputs + 2 outputs, double-buffered => 14 live tiles; keep each
        # tile around <= 2 MiB so the working set stays well under 48 MiB.
        max_tile_bytes = 2 << 20
        n_units = rows // sub
        target_units = max(1, min(n_units,
                                  max_tile_bytes // max(sub * cols * itemsize, 1)))
        # Largest divisor of n_units that is <= target_units (no partial blocks).
        best = 1
        i = 1
        while i * i <= n_units:
            if n_units % i == 0:
                if i <= target_units:
                    best = max(best, i)
                j = n_units // i
                if j <= target_units:
                    best = max(best, j)
            i += 1
        block_rows = best * sub

    grid = (rows // block_rows,)

    def to2d(a):
        return a.reshape(rows, cols)

    spec = pl.BlockSpec((block_rows, cols), lambda r: (r, 0))
    n_elems = rows * cols

    g_gamma2d, g_alpha2d = pl.pallas_call(
        _backward_kernel,
        out_shape=(jax.ShapeDtypeStruct((rows, cols), dtype),
                   jax.ShapeDtypeStruct((rows, cols), dtype)),
        grid_spec=pltpu.PrefetchScalarGridSpec(
            num_scalar_prefetch=0,
            grid=grid,
            in_specs=[spec] * 5,
            out_specs=(spec, spec),
        ),
        compiler_params=pltpu.CompilerParams(
            dimension_semantics=("parallel",),     # pure elementwise stream
            vmem_limit_bytes=48 << 20,             # fits v7x's 64 MiB/TC
        ),
        cost_estimate=pl.CostEstimate(
            flops=6 * n_elems,
            transcendentals=0,
            bytes_accessed=7 * n_elems * itemsize,  # 5 reads + 2 writes
        ),
    )(to2d(gamma), to2d(grad_Loss_val_alpha), to2d(mid),
      to2d(grad_alpha_gamma), to2d(beta))

    return g_gamma2d.reshape(shape), g_alpha2d.reshape(shape)


# ----------------------------------------------------------------------------
# custom_vjp wrapper mirroring torch.autograd.Function semantics.
# ----------------------------------------------------------------------------
@jax.custom_vjp
def total_loss_fn_apply(gamma, alpha, grad_Loss_val_alpha, grad_Loss_val_weight,
                        mid, grad_alpha_gamma, beta):
    return total_loss_fn_forward(gamma, alpha, grad_Loss_val_alpha,
                                 grad_Loss_val_weight, mid, grad_alpha_gamma, beta)


def _tlf_fwd(gamma, alpha, grad_Loss_val_alpha, grad_Loss_val_weight,
             mid, grad_alpha_gamma, beta):
    res = (gamma, grad_Loss_val_alpha, grad_Loss_val_weight,
           mid, grad_alpha_gamma, beta)
    return alpha, res


def _tlf_bwd(res, grad_output):
    # NOTE: mirrors the PyTorch backward exactly — grad_output is ignored and
    # the saved tensors are passed through as their own "grads".
    del grad_output
    gamma, grad_Loss_val_alpha, grad_Loss_val_weight, mid, grad_alpha_gamma, beta = res
    grad_gamma, grad_alpha = total_loss_fn_backward(
        gamma, grad_Loss_val_alpha, mid, grad_alpha_gamma, beta)
    return (grad_gamma, grad_alpha, grad_Loss_val_alpha, grad_Loss_val_weight,
            mid, grad_alpha_gamma, beta)


total_loss_fn_apply.defvjp(_tlf_fwd, _tlf_bwd)


# ----------------------------------------------------------------------------
# Demo / self-check.
# ----------------------------------------------------------------------------
if __name__ == "__main__":
    key = jax.random.PRNGKey(0)
    keys = jax.random.split(key, 6)

    batch, feat = 8, 32
    shape = (batch, feat)

    # gamma bounded away from 0 (backward divides by gamma^2).
    gamma = jax.random.uniform(keys[0], shape, jnp.float32, 0.5, 1.5)
    alpha = jax.nn.sigmoid(-30.0 * gamma)
    grad_Loss_val_alpha = jax.random.normal(keys[1], shape, jnp.float32)
    grad_Loss_val_weight = jax.random.normal(keys[2], shape, jnp.float32)
    mid = jax.random.normal(keys[3], shape, jnp.float32)
    grad_alpha_gamma = jax.random.normal(keys[4], shape, jnp.float32)
    beta = jax.random.normal(keys[5], shape, jnp.float32)

    # --- Forward: identity (zero-copy), exactly matching the PyTorch module.
    out = total_loss_fn_forward(gamma, alpha, grad_Loss_val_alpha,
                                grad_Loss_val_weight, mid, grad_alpha_gamma, beta)
    out = jax.block_until_ready(out)
    assert out.shape == alpha.shape and out.dtype == alpha.dtype
    assert jnp.array_equal(out, alpha)

    # --- Run the fused Pallas backward kernel once (single full-array block).
    g_gamma, g_alpha = jax.block_until_ready(
        total_loss_fn_backward(gamma, grad_Loss_val_alpha, mid,
                               grad_alpha_gamma, beta))
    ref_grad_alpha = (grad_Loss_val_alpha - 10.0 * mid) + beta + 10.0 / (gamma * gamma)
    ref_grad_gamma = ref_grad_alpha * grad_alpha_gamma
    assert jnp.allclose(g_alpha, ref_grad_alpha, rtol=1e-6, atol=1e-6)
    assert jnp.allclose(g_gamma, ref_grad_gamma, rtol=1e-6, atol=1e-6)

    # --- Exercise the multi-step tiled grid path (lane-aligned, rows tiled).
    big_shape = (4096, 512)
    bkeys = jax.random.split(jax.random.PRNGKey(1), 5)
    gamma_b = jax.random.uniform(bkeys[0], big_shape, jnp.float32, 0.5, 1.5)
    gla_b = jax.random.normal(bkeys[1], big_shape, jnp.float32)
    mid_b = jax.random.normal(bkeys[2], big_shape, jnp.float32)
    gag_b = jax.random.normal(bkeys[3], big_shape, jnp.float32)
    beta_b = jax.random.normal(bkeys[4], big_shape, jnp.float32)
    gg_b, ga_b = jax.block_until_ready(
        total_loss_fn_backward(gamma_b, gla_b, mid_b, gag_b, beta_b))
    ref_ga_b = (gla_b - 10.0 * mid_b) + beta_b + 10.0 / (gamma_b * gamma_b)
    ref_gg_b = ref_ga_b * gag_b
    assert jnp.allclose(ga_b, ref_ga_b, rtol=1e-6, atol=1e-5)
    assert jnp.allclose(gg_b, ref_gg_b, rtol=1e-6, atol=1e-5)

    # --- End-to-end vjp through the custom_vjp wrapper (uses the Pallas bwd).
    _, vjp_fn = jax.vjp(total_loss_fn_apply, gamma, alpha, grad_Loss_val_alpha,
                        grad_Loss_val_weight, mid, grad_alpha_gamma, beta)
    grads = jax.block_until_ready(vjp_fn(jnp.ones_like(alpha)))
    assert jnp.allclose(grads[0], ref_grad_gamma, rtol=1e-6, atol=1e-6)
    assert jnp.allclose(grads[1], ref_grad_alpha, rtol=1e-6, atol=1e-6)

    print("KERNEL_OK")
</pallas_src>

<mosaic_0001>
module attributes {stable_mosaic.version = 11 : i64} {
  func.func @_backward_kernel(%arg0: i32, %arg1: memref<8x32xf32, #tpu.memory_space<vmem>>, %arg2: memref<8x32xf32, #tpu.memory_space<vmem>>, %arg3: memref<8x32xf32, #tpu.memory_space<vmem>>, %arg4: memref<8x32xf32, #tpu.memory_space<vmem>>, %arg5: memref<8x32xf32, #tpu.memory_space<vmem>>, %arg6: memref<8x32xf32, #tpu.memory_space<vmem>>, %arg7: memref<8x32xf32, #tpu.memory_space<vmem>>) attributes {dimension_semantics = [#tpu.dimension_semantics<parallel>], iteration_bounds = array<i64: 1>, scalar_prefetch = 0 : i64, scratch_operands = 0 : i64, tpu.core_type = #tpu.core_type<tc>, window_params = [{transform_indices = @transform_0, window_bounds = array<i64: 8, 32>}, {transform_indices = @transform_1, window_bounds = array<i64: 8, 32>}, {transform_indices = @transform_2, window_bounds = array<i64: 8, 32>}, {transform_indices = @transform_3, window_bounds = array<i64: 8, 32>}, {transform_indices = @transform_4, window_bounds = array<i64: 8, 32>}, {transform_indices = @transform_5, window_bounds = array<i64: 8, 32>}, {transform_indices = @transform_6, window_bounds = array<i64: 8, 32>}]} {
    %c0 = arith.constant 0 : index
    %c0_0 = arith.constant 0 : index
    %0 = vector.load %arg1[%c0, %c0_0] : memref<8x32xf32, #tpu.memory_space<vmem>>, vector<8x32xf32>
    %c0_1 = arith.constant 0 : index
    %c0_2 = arith.constant 0 : index
    %1 = vector.load %arg2[%c0_1, %c0_2] : memref<8x32xf32, #tpu.memory_space<vmem>>, vector<8x32xf32>
    %c0_3 = arith.constant 0 : index
    %c0_4 = arith.constant 0 : index
    %2 = vector.load %arg3[%c0_3, %c0_4] : memref<8x32xf32, #tpu.memory_space<vmem>>, vector<8x32xf32>
    %cst = arith.constant 1.000000e+01 : f32
    %3 = vector.broadcast %cst : f32 to vector<8x32xf32>
    %4 = arith.mulf %3, %2 : vector<8x32xf32>
    %5 = arith.subf %1, %4 : vector<8x32xf32>
    %c0_5 = arith.constant 0 : index
    %c0_6 = arith.constant 0 : index
    %6 = vector.load %arg5[%c0_5, %c0_6] : memref<8x32xf32, #tpu.memory_space<vmem>>, vector<8x32xf32>
    %7 = arith.addf %5, %6 : vector<8x32xf32>
    %8 = arith.mulf %0, %0 : vector<8x32xf32>
    %cst_7 = arith.constant 1.000000e+01 : f32
    %9 = vector.broadcast %cst_7 : f32 to vector<8x32xf32>
    %10 = arith.divf %9, %8 : vector<8x32xf32>
    %11 = arith.addf %7, %10 : vector<8x32xf32>
    %c0_8 = arith.constant 0 : index
    %c0_9 = arith.constant 0 : index
    %12 = vector.load %arg7[%c0_8, %c0_9] : memref<8x32xf32, #tpu.memory_space<vmem>>, vector<8x32xf32>
    tpu.vector_store %arg7[%c0_8, %c0_9], %11 {strides = array<i32>} : memref<8x32xf32, #tpu.memory_space<vmem>>, vector<8x32xf32>,
    %c0_10 = arith.constant 0 : index
    %c0_11 = arith.constant 0 : index
    %13 = vector.load %arg4[%c0_10, %c0_11] : memref<8x32xf32, #tpu.memory_space<vmem>>, vector<8x32xf32>
    %14 = arith.mulf %11, %13 : vector<8x32xf32>
    %c0_12 = arith.constant 0 : index
    %c0_13 = arith.constant 0 : index
    %15 = vector.load %arg6[%c0_12, %c0_13] : memref<8x32xf32, #tpu.memory_space<vmem>>, vector<8x32xf32>
    tpu.vector_store %arg6[%c0_12, %c0_13], %14 {strides = array<i32>} : memref<8x32xf32, #tpu.memory_space<vmem>>, vector<8x32xf32>,
    return
  }
  func.func @transform_0(%arg0: i32) -> (i32, i32) {
    %c0_i32 = arith.constant 0 : i32
    %c0_i32_0 = arith.constant 0 : i32
    return %arg0, %c0_i32 : i32, i32
  }
  func.func @transform_1(%arg0: i32) -> (i32, i32) {
    %c0_i32 = arith.constant 0 : i32
    %c0_i32_0 = arith.constant 0 : i32
    return %arg0, %c0_i32 : i32, i32
  }
  func.func @transform_2(%arg0: i32) -> (i32, i32) {
    %c0_i32 = arith.constant 0 : i32
    %c0_i32_0 = arith.constant 0 : i32
    return %arg0, %c0_i32 : i32, i32
  }
  func.func @transform_3(%arg0: i32) -> (i32, i32) {
    %c0_i32 = arith.constant 0 : i32
    %c0_i32_0 = arith.constant 0 : i32
    return %arg0, %c0_i32 : i32, i32
  }
  func.func @transform_4(%arg0: i32) -> (i32, i32) {
    %c0_i32 = arith.constant 0 : i32
    %c0_i32_0 = arith.constant 0 : i32
    return %arg0, %c0_i32 : i32, i32
  }
  func.func @transform_5(%arg0: i32) -> (i32, i32) {
    %c0_i32 = arith.constant 0 : i32
    %c0_i32_0 = arith.constant 0 : i32
    return %arg0, %c0_i32 : i32, i32
  }
  func.func @transform_6(%arg0: i32) -> (i32, i32) {
    %c0_i32 = arith.constant 0 : i32
    %c0_i32_0 = arith.constant 0 : i32
    return %arg0, %c0_i32 : i32, i32
  }
}

</mosaic_0001>

<bundles_post_ra>
// kernel: tpu_custom_call.1
= control target key start
LH: loop header
LB: loop body
LE: loop exit
PB: predicated region body
PF: predicated region fallthrough
CT: control target
= control target key end

     0   :  { %12 = vsyncpa [#allocation3], 0  ;;  %s386_s0 = inlined_call_operand.hbm [shape: f32[8,32], index: 0, kind: input, shape index: {}]   ;;  %s387_s1 = inlined_call_operand.hbm [shape: f32[8,32], index: 1, kind: input, shape index: {}]   ;;  %s388_s2 = inlined_call_operand.hbm [shape: f32[8,32], index: 2, kind: input, shape index: {}]   ;;  %s389_s3 = inlined_call_operand.vmem [shape: f32[8,32], index: 3, kind: input, shape index: {}]   ;;  %s390_s4 = inlined_call_operand.hbm [shape: f32[8,32], index: 4, kind: input, shape index: {}]   ;;  %s391_s5 = inlined_call_operand.hbm [shape: f32[8,32], index: 5, kind: output, shape index: {0}]   ;;  %s392_s6 = inlined_call_operand.hbm [shape: f32[8,32], index: 6, kind: output, shape index: {1}]  }
   0x1   :  { %13 = vsyncpa [#allocation6], 0 }
   0x2   :  { %14 = vsyncpa [#allocation9], 0 }
   0x3   :  { %15 = vsyncpa [#allocation4], 0 }
   0x4   :  { %16 = vsyncpa [#allocation12], 0  ;;  %s268_s21 = smov [#allocation5]   ;;  %s269_s23 = smov [#allocation2]  }
   0x5   :  { %s33_s22 = sshll.u32 %s268_s21, 4  ;;  %s23_s24 = sshll.u32 %s269_s23, 4  ;;  %s34_s22 = int_to_ptr.vmem [resolvable:$true] %s33_s22  ;;  %s24_s24 = int_to_ptr.vmem [resolvable:$true] %s23_s24 }
   0x6   :  { %s126_s27 = scalar_lea.hbm %s387_s1, 128 }
   0x7   :  { %p127_p0 = scmp.ne.s32.totalorder %s387_s1, %s126_s27  ;;  %p130_p1 = scmp.lt.u32.totalorder %s126_s27, %s387_s1 }
   0x9   :  { %p132_p2 = pnand %p130_p1, %p127_p0 }
   0xb   :  { %135 = shalt.err (!%p132_p2)
}
   0xc   :  { %s136_s8 = scalar_lea.vmem %s34_s22, 128  ;;  %p141_p4 = scmp.lt.s32.totalorder %s34_s22, %s34_s22 }
   0xd   :  { %p137_p3 = scmp.ne.s32.totalorder %s34_s22, %s136_s8  ;;  %p142_p5 = scmp.lt.s32.totalorder %s136_s8, %s136_s8 }
   0xf   :  { %p143_p6 = por %p142_p5, %p141_p4 }
  0x11   :  { %p144_p7 = pnand %p143_p6, %p137_p3 }
  0x13   :  { %147 = shalt.err (!%p144_p7)
}
  0x14   :  { %36 = dma.hbm_to_vmem [thread:$0]  %s387_s1, 128, %s34_s22, [#allocation6]  }
  0x15   :  { %s148_s13 = scalar_lea.hbm %s386_s0, 128 }
  0x16   :  { %p149_p8 = scmp.ne.s32.totalorder %s386_s0, %s148_s13  ;;  %p152_p9 = scmp.lt.u32.totalorder %s148_s13, %s386_s0 }
  0x18   :  { %p154_p10 = pnand %p152_p9, %p149_p8 }
  0x1a   :  { %157 = shalt.err (!%p154_p10)
}
  0x1b   :  { %s158_s18 = scalar_lea.vmem %s24_s24, 128  ;;  %p163_p12 = scmp.lt.s32.totalorder %s24_s24, %s24_s24 }
  0x1c   :  { %p159_p11 = scmp.ne.s32.totalorder %s24_s24, %s158_s18  ;;  %p164_p13 = scmp.lt.s32.totalorder %s158_s18, %s158_s18 }
  0x1e   :  { %p165_p0 = por %p164_p13, %p163_p12 }
  0x20   :  { %p166_p1 = pnand %p165_p0, %p159_p11 }
  0x22   :  { %169 = shalt.err (!%p166_p1)
}
  0x23   :  { %26 = dma.hbm_to_vmem [thread:$0]  %s386_s0, 128, %s24_s24, [#allocation3]  }
  0x24   :  { %s270_s20 = smov [#allocation7]   ;;  %s271_s22 = smov [#allocation8]  }
  0x25   :  { %s43_s21 = sshll.u32 %s270_s20, 4  ;;  %s55_s23 = sshll.u32 %s271_s22, 4  ;;  %s44_s21 = int_to_ptr.vmem [resolvable:$true] %s43_s21  ;;  %s56_s23 = int_to_ptr.vmem [resolvable:$true] %s55_s23 }
  0x26   :  { %s170_s27 = scalar_lea.hbm %s388_s2, 128 }
  0x27   :  { %p171_p2 = scmp.ne.s32.totalorder %s388_s2, %s170_s27  ;;  %p174_p3 = scmp.lt.u32.totalorder %s170_s27, %s388_s2 }
  0x29   :  { %p176_p4 = pnand %p174_p3, %p171_p2 }
  0x2b   :  { %179 = shalt.err (!%p176_p4)
}
  0x2c   :  { %s180_s0 = scalar_lea.vmem %s44_s21, 128  ;;  %p185_p6 = scmp.lt.s32.totalorder %s44_s21, %s44_s21 }
  0x2d   :  { %p181_p5 = scmp.ne.s32.totalorder %s44_s21, %s180_s0  ;;  %p186_p7 = scmp.lt.s32.totalorder %s180_s0, %s180_s0 }
  0x2f   :  { %p187_p8 = por %p186_p7, %p185_p6 }
  0x31   :  { %p188_p9 = pnand %p187_p8, %p181_p5 }
  0x33   :  { %191 = shalt.err (!%p188_p9)
}
  0x34   :  { %46 = dma.hbm_to_vmem [thread:$0]  %s388_s2, 128, %s44_s21, [#allocation6]  }
  0x35   :  { %s192_s11 = scalar_lea.hbm %s390_s4, 128 }
  0x36   :  { %p193_p10 = scmp.ne.s32.totalorder %s390_s4, %s192_s11  ;;  %p196_p11 = scmp.lt.u32.totalorder %s192_s11, %s390_s4 }
  0x38   :  { %p198_p12 = pnand %p196_p11, %p193_p10 }
  0x3a   :  { %201 = shalt.err (!%p198_p12)
}
  0x3b   :  { %s202_s16 = scalar_lea.vmem %s56_s23, 128  ;;  %p207_p0 = scmp.lt.s32.totalorder %s56_s23, %s56_s23 }
  0x3c   :  { %p203_p13 = scmp.ne.s32.totalorder %s56_s23, %s202_s16  ;;  %p208_p1 = scmp.lt.s32.totalorder %s202_s16, %s202_s16 }
  0x3e   :  { %p209_p2 = por %p208_p1, %p207_p0 }
  0x40   :  { %p210_p3 = pnand %p209_p2, %p203_p13 }
  0x42   :  { %213 = shalt.err (!%p210_p3)
}
  0x43   :  { %58 = dma.hbm_to_vmem [thread:$0]  %s390_s4, 128, %s56_s23, [#allocation9]  }
  0x44   :  { %258 = dma.done.wait [#allocation3], 128  }
  0x45   :  { %259 = vsyncadd [#allocation3], 4294967168 }
  0x46   :  { %260 = dma.done.wait [#allocation6], 256  }
  0x47   :  { %261 = vsyncadd [#allocation6], 4294967040 }
  0x48   :  { %262 = dma.done.wait [#allocation9], 128  }
  0x49   :  { %263 = vsyncadd [#allocation9], 4294967168  ;;  %v71_v0 = vld [vmem:[#allocation2] sm:$0xff]  ;;  %v73_v1 = vld [vmem:[#allocation7] sm:$0xff]  ;;  %s272_s18 = smov [#allocation11]   ;;  %vm82_vm0 = vcmask 261120  }
  0x4a   :  { %v78_v2 = vmul.f32 %v71_v0, %v71_v0  ;;  %v74_v3 = vmul.f32 10.0, %v73_v1  ;;  %v72_v4 = vld [vmem:[#allocation5] sm:$0xff]  ;;  %v76_v6 = vld [vmem:[#allocation8] sm:$0xff]  ;;  %s103_s1 = sshll.u32 %s272_s18, 4  ;;  %v84_v10 = vld [vmem:[%s389_s3] sm:$0xff]  ;;  %s273_s20 = smov [#allocation10]   ;;  %s104_s1 = int_to_ptr.vmem [resolvable:$true] %s103_s1 }
  0x4b   :  { %s93_s21 = sshll.u32 %s273_s20, 4  ;;  %s214_s22 = scalar_lea.vmem %s104_s1, 128  ;;  %s94_s21 = int_to_ptr.vmem [resolvable:$true] %s93_s21 }
  0x4c   :  { %124 = vrcp.f32 %v78_v2  ;;  %v75_v5 = vsub.f32 %v72_v4, %v74_v3  ;;  %p215_p4 = scmp.ne.s32.totalorder %s104_s1, %s214_s22  ;;  %p219_p5 = scmp.lt.s32.totalorder %s104_s1, %s104_s1 }
  0x4d   :  { %p220_p6 = scmp.lt.s32.totalorder %s214_s22, %s214_s22 }
  0x4e   :  { %v77_v7 = vadd.f32 %v76_v6, %v75_v5 }
  0x4f   :  { %p221_p7 = por %p220_p6, %p219_p5 }
  0x51   :  { %p222_p8 = pnand %p221_p7, %p215_p4 }
  0x56   :  { %v125_v8 = vpop.eup %124 }
  0x57   :  { %v80_v9 = vmul.f32 10.0, %v125_v8 }
  0x59   :  { %v81_v11 = vadd.f32 %v80_v9, %v77_v7 }
  0x5b   :  { %83 = vst.msk [vmem:[#allocation11] sm:$0xff] %vm82_vm0, %v81_v11  ;;  %v85_v12 = vmul.f32 %v84_v10, %v81_v11 }
  0x5c   :  { %225 = shalt.err (!%p222_p8)
}
  0x5d   :  { %s226_s26 = scalar_lea.hbm %s392_s6, 128 }
  0x5e   :  { %p227_p9 = scmp.ne.s32.totalorder %s392_s6, %s226_s26  ;;  %p230_p10 = scmp.lt.u32.totalorder %s226_s26, %s392_s6 }
  0x60   :  { %p232_p11 = pnand %p230_p10, %p227_p9 }
  0x62   :  { %235 = shalt.err (!%p232_p11)
}
  0x63   :  { %106 = dma.vmem_to_hbm [thread:$0]  %s104_s1, 128, %s392_s6, [#allocation12]   ;;  %86 = vst.msk [vmem:[#allocation10] sm:$0xff] %vm82_vm0, %v85_v12 }
  0x64   :  { %s236_s0 = scalar_lea.vmem %s94_s21, 128  ;;  %p241_p13 = scmp.lt.s32.totalorder %s94_s21, %s94_s21 }
  0x65   :  { %p237_p12 = scmp.ne.s32.totalorder %s94_s21, %s236_s0  ;;  %p242_p0 = scmp.lt.s32.totalorder %s236_s0, %s236_s0 }
  0x67   :  { %p243_p1 = por %p242_p0, %p241_p13 }
  0x69   :  { %p244_p2 = pnand %p243_p1, %p237_p12 }
  0x6b   :  { %247 = shalt.err (!%p244_p2)
}
  0x6c   :  { %s248_s9 = scalar_lea.hbm %s391_s5, 128 }
  0x6d   :  { %p249_p3 = scmp.ne.s32.totalorder %s391_s5, %s248_s9  ;;  %p252_p4 = scmp.lt.u32.totalorder %s248_s9, %s391_s5 }
  0x6f   :  { %p254_p5 = pnand %p252_p4, %p249_p3 }
  0x71   :  { %257 = shalt.err (!%p254_p5)
}
  0x72   :  { %96 = dma.vmem_to_hbm [thread:$0]  %s94_s21, 128, %s391_s5, [#allocation4]  }
  0x73   :  { %264 = dma.done.wait [#allocation4], 128  }
  0x74   :  { %265 = vsyncadd [#allocation4], 4294967168 }
  0x75   :  { %266 = dma.done.wait [#allocation12], 128  }
  0x76   :  { %267 = vsyncadd [#allocation12], 4294967168 }
  0x77   :  { %113 = vsyncpa [#allocation3], 1 }
  0x78   :  { %114 = vsyncpa [#allocation6], 1 }
  0x79   :  { %115 = vsyncpa [#allocation9], 1 }
  0x7a   :  { %116 = vsyncpa [#allocation4], 1 }
  0x7b   :  { %117 = vsyncpa [#allocation12], 1 }

</bundles_post_ra>
